<compile_context>
chip_gen: v7x
topology: tpu7x:2x2x1
jax: 0.10.0
libtpu: 0.0.40
codegen_flags: <defaults>
</compile_context>

<pallas_src>
import math
from functools import partial

import jax
import jax.numpy as jnp
from jax import lax
from jax.experimental import pallas as pl
from jax.experimental.pallas import tpu as pltpu

MY_INF = 1000000000000.0      # parity with the PyTorch module (mask fill value)
_NEG_BIG = -1e30              # additive bias for padded kv columns


def _round_up(x, m):
    return (x + m - 1) // m * m


def _sublane_multiple(dtype):
    # Minimum second-minor packing: 8 (f32), 16 (bf16/f16), 32 (int8/fp8).
    return max(8, 32 // jnp.dtype(dtype).itemsize)


def _choose_tile(length, max_tile, sub):
    """Largest aligned tile <= max_tile; never degrade below the packing unit."""
    if length <= max_tile:
        return _round_up(length, sub)
    return max(sub, (max_tile // sub) * sub)


def _flash_attn_kernel(q_ref, k_ref, v_ref, o_ref, m_sc, l_sc, acc_sc, *,
                       block_k, k_len, mask_kv_tail, heads, d_k, mxu_dtype):
    """Blocks: q (H, tq, d_k), k/v (H, tk, d_k), out (tq, H*d_k)."""
    kv_idx = pl.program_id(2)
    num_kv = pl.num_programs(2)

    @pl.when(kv_idx == 0)
    def _init():
        m_sc[...] = jnp.full_like(m_sc, -jnp.inf)
        l_sc[...] = jnp.zeros_like(l_sc)
        acc_sc[...] = jnp.zeros_like(acc_sc)

    q = q_ref[...]                       # (H, tq, d_k); 1/sqrt(d_k) pre-folded
    k = k_ref[...]                       # (H, tk, d_k)
    v = v_ref[...]                       # (H, tk, d_k)
    if mxu_dtype is not None:
        q = q.astype(mxu_dtype)
        k = k.astype(mxu_dtype)
        v = v.astype(mxu_dtype)

    # Head-batched scores on the MXU, f32 accumulation, no explicit transpose.
    s = jnp.einsum("hqd,hkd->hqk", q, k,
                   preferred_element_type=jnp.float32)       # (H, tq, tk)

    if mask_kv_tail:
        # Only the final kv tile has padded columns; gate all masking work
        # behind the scalar predicate so earlier kv steps pay nothing.
        def _mask_tail(sc):
            col = kv_idx * block_k + lax.broadcasted_iota(jnp.int32, sc.shape, 2)
            return jnp.where(col < k_len, sc, _NEG_BIG)

        s = lax.cond(kv_idx == num_kv - 1, _mask_tail, lambda sc: sc, s)

    # Online softmax (exact, f32).
    m_prev = m_sc[...]
    m_new = jnp.maximum(m_prev, jnp.max(s, axis=-1, keepdims=True))
    alpha = jnp.exp(m_prev - m_new)
    p = jnp.exp(s - m_new)
    l_sc[...] = alpha * l_sc[...] + jnp.sum(p, axis=-1, keepdims=True)
    acc_sc[...] = alpha * acc_sc[...] + jnp.einsum(
        "hqk,hkd->hqd", p.astype(v.dtype), v,
        preferred_element_type=jnp.float32)
    m_sc[...] = m_new

    @pl.when(kv_idx == num_kv - 1)
    def _finalize():
        inv_l = pl.reciprocal(l_sc[...], approx=False)        # (H, tq, 1)
        out = acc_sc[...] * inv_l                             # (H, tq, d_k) f32
        # Lane-dense (tq, heads*d_k) output block.  Per-head static lane-slice
        # stores happen only once per q tile (finalize); the HBM writeback of
        # the block is a single full-width DMA.
        for h in range(heads):                                # static unroll
            o_ref[:, h * d_k:(h + 1) * d_k] = out[h].astype(o_ref.dtype)


def _flash_attention(qh, kh, vh, *, d_model, block_q=256, block_k=512,
                     mxu_dtype=None, kv_buffers=None):
    """qh/kh/vh: (n, heads, L, d_k) -> (n, Lq, heads*d_k)."""
    n, heads, q_len, d_k = qh.shape
    _, _, k_len, _ = kh.shape

    sub = _sublane_multiple(qh.dtype)
    tq = _choose_tile(q_len, block_q, sub)
    tk = _choose_tile(k_len, block_k, sub)
    q_pad = _round_up(q_len, tq)
    k_pad = _round_up(k_len, tk)

    if q_pad != q_len:
        qh = jnp.pad(qh, ((0, 0), (0, 0), (0, q_pad - q_len), (0, 0)))
    if k_pad != k_len:
        kh = jnp.pad(kh, ((0, 0), (0, 0), (0, k_pad - k_len), (0, 0)))
        vh = jnp.pad(vh, ((0, 0), (0, 0), (0, k_pad - k_len), (0, 0)))

    kernel = partial(_flash_attn_kernel, block_k=tk, k_len=k_len,
                     mask_kv_tail=(k_pad != k_len), heads=heads, d_k=d_k,
                     mxu_dtype=mxu_dtype)

    # VMEM budget from the actual buffer sizes (double-buffered blocks, f32
    # score/probability temporaries, accumulator scratch) with 2x margin,
    # clamped so v7x's 64 MiB physical VMEM keeps headroom.
    itemsize = jnp.dtype(qh.dtype).itemsize
    kvb = kv_buffers if kv_buffers else 2
    blk_bytes = (2 * heads * tq * d_k * itemsize              # q (double-buf)
                 + 2 * kvb * heads * tk * d_k * itemsize      # k + v
                 + 2 * tq * d_model * itemsize)               # out
    scratch_bytes = heads * tq * (d_k + 2) * 4
    score_bytes = 2 * heads * tq * tk * 4                     # s and p, f32
    est = blk_bytes + scratch_bytes + score_bytes
    vmem_limit = int(min(max(2 * est, 24 * 1024 * 1024), 56 * 1024 * 1024))

    kv_kwargs = {}
    if kv_buffers and kv_buffers != 2:
        # Deeper K/V input pipelining (useful on v5e with small d_k tiles).
        kv_kwargs = dict(pipeline_mode=pl.Buffered(kv_buffers))

    out = pl.pallas_call(
        kernel,
        out_shape=jax.ShapeDtypeStruct((n, q_pad, d_model), qh.dtype),
        grid_spec=pltpu.PrefetchScalarGridSpec(
            num_scalar_prefetch=0,
            grid=(n, q_pad // tq, k_pad // tk),
            in_specs=[
                pl.BlockSpec((None, heads, tq, d_k),
                             lambda b, qi, ki: (b, 0, qi, 0)),
                pl.BlockSpec((None, heads, tk, d_k),
                             lambda b, qi, ki: (b, 0, ki, 0), **kv_kwargs),
                pl.BlockSpec((None, heads, tk, d_k),
                             lambda b, qi, ki: (b, 0, ki, 0), **kv_kwargs),
            ],
            out_specs=pl.BlockSpec((None, tq, d_model),
                                   lambda b, qi, ki: (b, qi, 0)),
            scratch_shapes=[
                pltpu.VMEM((heads, tq, 1), jnp.float32),      # running max m
                pltpu.VMEM((heads, tq, 1), jnp.float32),      # running denom l
                pltpu.VMEM((heads, tq, d_k), jnp.float32),    # running numerator
            ],
        ),
        compiler_params=pltpu.CompilerParams(
            # batch / q tiles parallel (megacore / v7x 2-TC sharding); kv is
            # the innermost reduction ("arbitrary") axis.
            dimension_semantics=("parallel", "parallel", "arbitrary"),
            vmem_limit_bytes=vmem_limit,
        ),
    )(qh, kh, vh)

    if q_pad != q_len:
        out = out[:, :q_len, :]
    return out


def multi_head_attention(q, k, v, params, *, heads, mask=None,
                         block_q=256, block_k=512, mxu_dtype=None,
                         kv_buffers=None):
    """q: (N, Lq, D), k/v: (N, Lk, D). Returns (N, Lq, D).  Eval-mode forward."""
    if mask is not None:
        # TODO(synk): boolean mask (masked_fill with -MY_INF) not wired into the
        # Pallas kernel; it would enter as a per-kv-tile additive bias block.
        raise NotImplementedError("mask path not implemented in Pallas kernel")

    n, q_len, d_model = q.shape
    _, k_len, _ = k.shape
    assert d_model % heads == 0
    d_k = d_model // heads
    scale = 1.0 / math.sqrt(d_k)

    # Fold the softmax scale into the Q projection (trace-time, zero runtime
    # cost) -> the kernel never scales the (tq, tk) score tile.
    wq = params["wq"] * scale
    bq = params["bq"] * scale

    # Q/K/V projections: plain dense GEMMs -> XLA.
    qp = (q @ wq.T + bq).reshape(n, q_len, heads, d_k)
    kp = (k @ params["wk"].T + params["bk"]).reshape(n, k_len, heads, d_k)
    vp = (v @ params["wv"].T + params["bv"]).reshape(n, k_len, heads, d_k)

    # Head-major layout for the head-batched kernel einsum (K/V blocks are
    # re-read once per q tile inside the grid, so relayouting them per-step
    # in-kernel would cost more than one XLA transpose here).
    # TODO(synk): fold these transposes into the projection GEMM output layout.
    qp = qp.transpose(0, 2, 1, 3)
    kp = kp.transpose(0, 2, 1, 3)
    vp = vp.transpose(0, 2, 1, 3)

    # Kernel writes (n, Lq, heads*d_k) directly -> no O transpose/reshape here.
    o = _flash_attention(qp, kp, vp, d_model=d_model, block_q=block_q,
                         block_k=block_k, mxu_dtype=mxu_dtype,
                         kv_buffers=kv_buffers)
    out = o @ params["wo"].T + params["bo"]
    # TODO(synk): nn.Dropout treated as identity (eval-mode semantics).
    return out


def _reference(q, k, v, params, *, heads):
    """Pure-JAX reference mirroring the PyTorch module (mask=None, eval dropout)."""
    n, q_len, d_model = q.shape
    _, k_len, _ = k.shape
    d_k = d_model // heads

    def lin(x, w, b):
        return x @ w.T + b

    qp = lin(q, params["wq"], params["bq"]).reshape(n, q_len, heads, d_k).transpose(0, 2, 1, 3)
    kp = lin(k, params["wk"], params["bk"]).reshape(n, k_len, heads, d_k).transpose(0, 2, 1, 3)
    vp = lin(v, params["wv"], params["bv"]).reshape(n, k_len, heads, d_k).transpose(0, 2, 1, 3)

    s = jnp.einsum("nhqd,nhkd->nhqk", qp, kp) / math.sqrt(d_k)
    p = jax.nn.softmax(s, axis=-1)
    o = jnp.einsum("nhqk,nhkd->nhqd", p, vp)
    o = o.transpose(0, 2, 1, 3).reshape(n, q_len, d_model)
    return lin(o, params["wo"], params["bo"])


if __name__ == "__main__":
    def make_params(key, d_model):
        keys = jax.random.split(key, 8)
        bound = 1.0 / math.sqrt(d_model)   # nn.Linear default init range

        def u(kk, shape):
            return jax.random.uniform(kk, shape, jnp.float32, -bound, bound)

        return {
            "wq": u(keys[0], (d_model, d_model)), "bq": u(keys[1], (d_model,)),
            "wk": u(keys[2], (d_model, d_model)), "bk": u(keys[3], (d_model,)),
            "wv": u(keys[4], (d_model, d_model)), "bv": u(keys[5], (d_model,)),
            "wo": u(keys[6], (d_model, d_model)), "bo": u(keys[7], (d_model,)),
        }

    key = jax.random.PRNGKey(0)

    # Case 1: canonical small shapes (single q/kv tile, all heads in one block).
    heads, d_model, batch, q_len, k_len = 4, 32, 2, 8, 8
    kp_, kq_, kk_, kv_, key = jax.random.split(key, 5)
    params = make_params(kp_, d_model)
    q = jax.random.normal(kq_, (batch, q_len, d_model), jnp.float32)
    k_in = jax.random.normal(kk_, (batch, k_len, d_model), jnp.float32)
    v = jax.random.normal(kv_, (batch, k_len, d_model), jnp.float32)

    out = jax.block_until_ready(
        multi_head_attention(q, k_in, v, params, heads=heads))
    ref = _reference(q, k_in, v, params, heads=heads)
    assert out.shape == (batch, q_len, d_model)
    err1 = jnp.max(jnp.abs(out - ref))
    assert jnp.allclose(out, ref, atol=1e-4, rtol=1e-4), f"case1 max abs err {err1}"

    # Case 2: multi-tile q/kv, padded kv tail (gated mask), multi-step online softmax.
    heads2, d_model2, batch2, q_len2, k_len2 = 2, 16, 1, 40, 24
    kp_, kq_, kk_, kv_, key = jax.random.split(key, 5)
    params2 = make_params(kp_, d_model2)
    q2 = jax.random.normal(kq_, (batch2, q_len2, d_model2), jnp.float32)
    k2 = jax.random.normal(kk_, (batch2, k_len2, d_model2), jnp.float32)
    v2 = jax.random.normal(kv_, (batch2, k_len2, d_model2), jnp.float32)

    out2 = jax.block_until_ready(multi_head_attention(
        q2, k2, v2, params2, heads=heads2, block_q=16, block_k=16))
    ref2 = _reference(q2, k2, v2, params2, heads=heads2)
    err2 = jnp.max(jnp.abs(out2 - ref2))
    assert jnp.allclose(out2, ref2, atol=1e-4, rtol=1e-4), f"case2 max abs err {err2}"

    print("KERNEL_OK")
</pallas_src>

<mosaic_0001>
module attributes {stable_mosaic.version = 11 : i64} {
  func.func @_flash_attn_kernel(%arg0: i32, %arg1: i32, %arg2: i32, %arg3: memref<1x4x8x8xf32, #tpu.memory_space<vmem>>, %arg4: memref<1x4x8x8xf32, #tpu.memory_space<vmem>>, %arg5: memref<1x4x8x8xf32, #tpu.memory_space<vmem>>, %arg6: memref<1x8x32xf32, #tpu.memory_space<vmem>>, %arg7: memref<4x8x1xf32, #tpu.memory_space<vmem>>, %arg8: memref<4x8x1xf32, #tpu.memory_space<vmem>>, %arg9: memref<4x8x8xf32, #tpu.memory_space<vmem>>) attributes {dimension_semantics = [#tpu.dimension_semantics<parallel>, #tpu.dimension_semantics<parallel>, #tpu.dimension_semantics<arbitrary>], iteration_bounds = array<i64: 2, 1, 1>, scalar_prefetch = 0 : i64, scratch_operands = 3 : i64, tpu.core_type = #tpu.core_type<tc>, window_params = [{transform_indices = @transform_0, window_bounds = array<i64: 1, 4, 8, 8>}, {transform_indices = @transform_1, window_bounds = array<i64: 1, 4, 8, 8>}, {transform_indices = @transform_2, window_bounds = array<i64: 1, 4, 8, 8>}, {transform_indices = @transform_3, window_bounds = array<i64: 1, 8, 32>}]} {
    %c0_i32 = arith.constant 0 : i32
    %0 = arith.cmpi eq, %arg2, %c0_i32 : i32
    %1 = arith.extui %0 : i1 to i32
    %c0_i32_0 = arith.constant 0 : i32
    %2 = arith.cmpi ne, %1, %c0_i32_0 : i32
    scf.if %2 {
      %cst_35 = arith.constant 0xFF800000 : f32
      %35 = vector.broadcast %cst_35 : f32 to vector<4x8x1xf32>
      %c0_36 = arith.constant 0 : index
      %c0_37 = arith.constant 0 : index
      %c0_38 = arith.constant 0 : index
      %36 = vector.load %arg7[%c0_36, %c0_37, %c0_38] : memref<4x8x1xf32, #tpu.memory_space<vmem>>, vector<4x8x1xf32>
      tpu.vector_store %arg7[%c0_36, %c0_37, %c0_38], %35 {strides = array<i32>} : memref<4x8x1xf32, #tpu.memory_space<vmem>>, vector<4x8x1xf32>,
      %cst_39 = arith.constant 0.000000e+00 : f32
      %37 = vector.broadcast %cst_39 : f32 to vector<4x8x1xf32>
      %c0_40 = arith.constant 0 : index
      %c0_41 = arith.constant 0 : index
      %c0_42 = arith.constant 0 : index
      %38 = vector.load %arg8[%c0_40, %c0_41, %c0_42] : memref<4x8x1xf32, #tpu.memory_space<vmem>>, vector<4x8x1xf32>
      tpu.vector_store %arg8[%c0_40, %c0_41, %c0_42], %37 {strides = array<i32>} : memref<4x8x1xf32, #tpu.memory_space<vmem>>, vector<4x8x1xf32>,
      %cst_43 = arith.constant 0.000000e+00 : f32
      %39 = vector.broadcast %cst_43 : f32 to vector<4x8x8xf32>
      %c0_44 = arith.constant 0 : index
      %c0_45 = arith.constant 0 : index
      %c0_46 = arith.constant 0 : index
      %40 = vector.load %arg9[%c0_44, %c0_45, %c0_46] : memref<4x8x8xf32, #tpu.memory_space<vmem>>, vector<4x8x8xf32>
      tpu.vector_store %arg9[%c0_44, %c0_45, %c0_46], %39 {strides = array<i32>} : memref<4x8x8xf32, #tpu.memory_space<vmem>>, vector<4x8x8xf32>,
    } else {
    }
    %c0 = arith.constant 0 : index
    %c0_1 = arith.constant 0 : index
    %c0_2 = arith.constant 0 : index
    %c0_3 = arith.constant 0 : index
    %3 = vector.load %arg3[%c0, %c0_1, %c0_2, %c0_3] : memref<1x4x8x8xf32, #tpu.memory_space<vmem>>, vector<1x4x8x8xf32>
    %4 = vector.shape_cast %3 : vector<1x4x8x8xf32> to vector<4x8x8xf32>
    %c0_4 = arith.constant 0 : index
    %c0_5 = arith.constant 0 : index
    %c0_6 = arith.constant 0 : index
    %c0_7 = arith.constant 0 : index
    %5 = vector.load %arg4[%c0_4, %c0_5, %c0_6, %c0_7] : memref<1x4x8x8xf32, #tpu.memory_space<vmem>>, vector<1x4x8x8xf32>
    %6 = vector.shape_cast %5 : vector<1x4x8x8xf32> to vector<4x8x8xf32>
    %c0_8 = arith.constant 0 : index
    %c0_9 = arith.constant 0 : index
    %c0_10 = arith.constant 0 : index
    %c0_11 = arith.constant 0 : index
    %7 = vector.load %arg5[%c0_8, %c0_9, %c0_10, %c0_11] : memref<1x4x8x8xf32, #tpu.memory_space<vmem>>, vector<1x4x8x8xf32>
    %8 = vector.shape_cast %7 : vector<1x4x8x8xf32> to vector<4x8x8xf32>
    "tpu.trace_start"() <{level = 10 : i32, message = "hqd,hkd->hqk"}> : () -> ()
    %cst = arith.constant dense<0.000000e+00> : vector<4x8x8xf32>
    %9 = tpu.matmul %4, %6, %cst {dimension_numbers = #tpu.dot_dimension_numbers<[2], [2], [1], [1], [0, 0, 0, 1, 1, 1], [0], [0]>} : vector<4x8x8xf32>, vector<4x8x8xf32>, vector<4x8x8xf32> -> vector<4x8x8xf32>
    "tpu.trace_stop"() : () -> ()
    %c0_12 = arith.constant 0 : index
    %c0_13 = arith.constant 0 : index
    %c0_14 = arith.constant 0 : index
    %10 = vector.load %arg7[%c0_12, %c0_13, %c0_14] : memref<4x8x1xf32, #tpu.memory_space<vmem>>, vector<4x8x1xf32>
    %cst_15 = arith.constant dense<0xFF800000> : vector<4x8xf32>
    %11 = vector.multi_reduction <maximumf>, %9, %cst_15 [2] : vector<4x8x8xf32> to vector<4x8xf32>
    %12 = vector.shape_cast %11 : vector<4x8xf32> to vector<4x8x1xf32>
    %13 = arith.maximumf %10, %12 : vector<4x8x1xf32>
    %14 = arith.subf %10, %13 : vector<4x8x1xf32>
    %15 = math.exp %14 : vector<4x8x1xf32>
    %16 = vector.broadcast %13 : vector<4x8x1xf32> to vector<4x8x8xf32>
    %17 = arith.subf %9, %16 : vector<4x8x8xf32>
    %18 = math.exp %17 : vector<4x8x8xf32>
    %c0_16 = arith.constant 0 : index
    %c0_17 = arith.constant 0 : index
    %c0_18 = arith.constant 0 : index
    %19 = vector.load %arg8[%c0_16, %c0_17, %c0_18] : memref<4x8x1xf32, #tpu.memory_space<vmem>>, vector<4x8x1xf32>
    %20 = arith.mulf %15, %19 : vector<4x8x1xf32>
    %cst_19 = arith.constant dense<0.000000e+00> : vector<4x8xf32>
    %21 = vector.multi_reduction <add>, %18, %cst_19 [2] : vector<4x8x8xf32> to vector<4x8xf32>
    %22 = vector.shape_cast %21 : vector<4x8xf32> to vector<4x8x1xf32>
    %23 = arith.addf %20, %22 : vector<4x8x1xf32>
    %c0_20 = arith.constant 0 : index
    %c0_21 = arith.constant 0 : index
    %c0_22 = arith.constant 0 : index
    %24 = vector.load %arg8[%c0_20, %c0_21, %c0_22] : memref<4x8x1xf32, #tpu.memory_space<vmem>>, vector<4x8x1xf32>
    tpu.vector_store %arg8[%c0_20, %c0_21, %c0_22], %23 {strides = array<i32>} : memref<4x8x1xf32, #tpu.memory_space<vmem>>, vector<4x8x1xf32>,
    %c0_23 = arith.constant 0 : index
    %c0_24 = arith.constant 0 : index
    %c0_25 = arith.constant 0 : index
    %25 = vector.load %arg9[%c0_23, %c0_24, %c0_25] : memref<4x8x8xf32, #tpu.memory_space<vmem>>, vector<4x8x8xf32>
    %26 = vector.broadcast %15 : vector<4x8x1xf32> to vector<4x8x8xf32>
    %27 = arith.mulf %26, %25 : vector<4x8x8xf32>
    "tpu.trace_start"() <{level = 10 : i32, message = "hqk,hkd->hqd"}> : () -> ()
    %cst_26 = arith.constant dense<0.000000e+00> : vector<4x8x8xf32>
    %28 = tpu.matmul %18, %8, %cst_26 {dimension_numbers = #tpu.dot_dimension_numbers<[2], [1], [1], [2], [0, 0, 0, 1, 1, 2], [0], [0]>} : vector<4x8x8xf32>, vector<4x8x8xf32>, vector<4x8x8xf32> -> vector<4x8x8xf32>
    "tpu.trace_stop"() : () -> ()
    %29 = arith.addf %27, %28 : vector<4x8x8xf32>
    %c0_27 = arith.constant 0 : index
    %c0_28 = arith.constant 0 : index
    %c0_29 = arith.constant 0 : index
    %30 = vector.load %arg9[%c0_27, %c0_28, %c0_29] : memref<4x8x8xf32, #tpu.memory_space<vmem>>, vector<4x8x8xf32>
    tpu.vector_store %arg9[%c0_27, %c0_28, %c0_29], %29 {strides = array<i32>} : memref<4x8x8xf32, #tpu.memory_space<vmem>>, vector<4x8x8xf32>,
    %c0_30 = arith.constant 0 : index
    %c0_31 = arith.constant 0 : index
    %c0_32 = arith.constant 0 : index
    %31 = vector.load %arg7[%c0_30, %c0_31, %c0_32] : memref<4x8x1xf32, #tpu.memory_space<vmem>>, vector<4x8x1xf32>
    tpu.vector_store %arg7[%c0_30, %c0_31, %c0_32], %13 {strides = array<i32>} : memref<4x8x1xf32, #tpu.memory_space<vmem>>, vector<4x8x1xf32>,
    %c0_i32_33 = arith.constant 0 : i32
    %32 = arith.cmpi eq, %arg2, %c0_i32_33 : i32
    %33 = arith.extui %32 : i1 to i32
    %c0_i32_34 = arith.constant 0 : i32
    %34 = arith.cmpi ne, %33, %c0_i32_34 : i32
    scf.if %34 {
      %c0_35 = arith.constant 0 : index
      %c0_36 = arith.constant 0 : index
      %c0_37 = arith.constant 0 : index
      %35 = vector.load %arg8[%c0_35, %c0_36, %c0_37] : memref<4x8x1xf32, #tpu.memory_space<vmem>>, vector<4x8x1xf32>
      %36 = tpu.reciprocal %35 : vector<4x8x1xf32> -> vector<4x8x1xf32>
      %c0_38 = arith.constant 0 : index
      %c0_39 = arith.constant 0 : index
      %c0_40 = arith.constant 0 : index
      %37 = vector.load %arg9[%c0_38, %c0_39, %c0_40] : memref<4x8x8xf32, #tpu.memory_space<vmem>>, vector<4x8x8xf32>
      %38 = vector.broadcast %36 : vector<4x8x1xf32> to vector<4x8x8xf32>
      %39 = arith.mulf %37, %38 : vector<4x8x8xf32>
      %40 = vector.extract_strided_slice %39 {offsets = [0, 0, 0], sizes = [1, 8, 8], strides = [1, 1, 1]} : vector<4x8x8xf32> to vector<1x8x8xf32>
      %41 = vector.shape_cast %40 : vector<1x8x8xf32> to vector<8x8xf32>
      %c0_41 = arith.constant 0 : index
      %c0_42 = arith.constant 0 : index
      %c0_43 = arith.constant 0 : index
      %42 = vector.load %arg6[%c0_41, %c0_42, %c0_43] : memref<1x8x32xf32, #tpu.memory_space<vmem>>, vector<1x8x8xf32>
      %43 = vector.shape_cast %42 : vector<1x8x8xf32> to vector<8x8xf32>
      %44 = vector.shape_cast %41 : vector<8x8xf32> to vector<1x8x8xf32>
      tpu.vector_store %arg6[%c0_41, %c0_42, %c0_43], %44 {strides = array<i32>} : memref<1x8x32xf32, #tpu.memory_space<vmem>>, vector<1x8x8xf32>,
      %45 = vector.extract_strided_slice %39 {offsets = [1, 0, 0], sizes = [1, 8, 8], strides = [1, 1, 1]} : vector<4x8x8xf32> to vector<1x8x8xf32>
      %46 = vector.shape_cast %45 : vector<1x8x8xf32> to vector<8x8xf32>
      %c0_44 = arith.constant 0 : index
      %c0_45 = arith.constant 0 : index
      %c8 = arith.constant 8 : index
      %47 = vector.load %arg6[%c0_44, %c0_45, %c8] : memref<1x8x32xf32, #tpu.memory_space<vmem>>, vector<1x8x8xf32>
      %48 = vector.shape_cast %47 : vector<1x8x8xf32> to vector<8x8xf32>
      %49 = vector.shape_cast %46 : vector<8x8xf32> to vector<1x8x8xf32>
      tpu.vector_store %arg6[%c0_44, %c0_45, %c8], %49 {strides = array<i32>} : memref<1x8x32xf32, #tpu.memory_space<vmem>>, vector<1x8x8xf32>,
      %50 = vector.extract_strided_slice %39 {offsets = [2, 0, 0], sizes = [1, 8, 8], strides = [1, 1, 1]} : vector<4x8x8xf32> to vector<1x8x8xf32>
      %51 = vector.shape_cast %50 : vector<1x8x8xf32> to vector<8x8xf32>
      %c0_46 = arith.constant 0 : index
      %c0_47 = arith.constant 0 : index
      %c16 = arith.constant 16 : index
      %52 = vector.load %arg6[%c0_46, %c0_47, %c16] : memref<1x8x32xf32, #tpu.memory_space<vmem>>, vector<1x8x8xf32>
      %53 = vector.shape_cast %52 : vector<1x8x8xf32> to vector<8x8xf32>
      %54 = vector.shape_cast %51 : vector<8x8xf32> to vector<1x8x8xf32>
      tpu.vector_store %arg6[%c0_46, %c0_47, %c16], %54 {strides = array<i32>} : memref<1x8x32xf32, #tpu.memory_space<vmem>>, vector<1x8x8xf32>,
      %55 = vector.extract_strided_slice %39 {offsets = [3, 0, 0], sizes = [1, 8, 8], strides = [1, 1, 1]} : vector<4x8x8xf32> to vector<1x8x8xf32>
      %56 = vector.shape_cast %55 : vector<1x8x8xf32> to vector<8x8xf32>
      %c0_48 = arith.constant 0 : index
      %c0_49 = arith.constant 0 : index
      %c24 = arith.constant 24 : index
      %57 = vector.load %arg6[%c0_48, %c0_49, %c24] : memref<1x8x32xf32, #tpu.memory_space<vmem>>, vector<1x8x8xf32>
      %58 = vector.shape_cast %57 : vector<1x8x8xf32> to vector<8x8xf32>
      %59 = vector.shape_cast %56 : vector<8x8xf32> to vector<1x8x8xf32>
      tpu.vector_store %arg6[%c0_48, %c0_49, %c24], %59 {strides = array<i32>} : memref<1x8x32xf32, #tpu.memory_space<vmem>>, vector<1x8x8xf32>,
    } else {
    }
    return
  }
  func.func @transform_0(%arg0: i32, %arg1: i32, %arg2: i32) -> (i32, i32, i32, i32) {
    %c0_i32 = arith.constant 0 : i32
    %c0_i32_0 = arith.constant 0 : i32
    %c0_i32_1 = arith.constant 0 : i32
    return %arg0, %c0_i32, %arg1, %c0_i32_0 : i32, i32, i32, i32
  }
  func.func @transform_1(%arg0: i32, %arg1: i32, %arg2: i32) -> (i32, i32, i32, i32) {
    %c0_i32 = arith.constant 0 : i32
    %c0_i32_0 = arith.constant 0 : i32
    %c0_i32_1 = arith.constant 0 : i32
    return %arg0, %c0_i32, %arg2, %c0_i32_0 : i32, i32, i32, i32
  }
  func.func @transform_2(%arg0: i32, %arg1: i32, %arg2: i32) -> (i32, i32, i32, i32) {
    %c0_i32 = arith.constant 0 : i32
    %c0_i32_0 = arith.constant 0 : i32
    %c0_i32_1 = arith.constant 0 : i32
    return %arg0, %c0_i32, %arg2, %c0_i32_0 : i32, i32, i32, i32
  }
  func.func @transform_3(%arg0: i32, %arg1: i32, %arg2: i32) -> (i32, i32, i32) {
    %c0_i32 = arith.constant 0 : i32
    %c0_i32_0 = arith.constant 0 : i32
    return %arg0, %arg1, %c0_i32 : i32, i32, i32
  }
}

</mosaic_0001>

<bundles_post_ra>
// kernel: tpu_custom_call.1
= control target key start
LH: loop header
LB: loop body
LE: loop exit
PB: predicated region body
PF: predicated region fallthrough
CT: control target
= control target key end

     0   :  { %s2056_s0 = inlined_call_operand.hbm [shape: f32[2,4,8,8], index: 0, kind: input, shape index: {}]   ;;  %s2057_s1 = inlined_call_operand.hbm [shape: f32[2,4,8,8], index: 1, kind: input, shape index: {}]   ;;  %s2058_s2 = inlined_call_operand.hbm [shape: f32[2,4,8,8], index: 2, kind: input, shape index: {}]   ;;  %s2059_s3 = inlined_call_operand.hbm [shape: f32[2,8,32], index: 3, kind: output, shape index: {}]  }
   0x1   :  { %2069 = sst [smem:[#allocation18_spill]] %s2057_s1 }
   0x2   :  { %8 = vsyncpa [#allocation6], 0 }
   0x3   :  { %10 = vsyncpa [#allocation6 + $0x1], 0 }
   0x4   :  { %11 = vsyncpa [#allocation9], 0 }
   0x5   :  { %13 = vsyncpa [#allocation9 + $0x1], 0 }
   0x6   :  { %14 = vsyncpa [#allocation7], 0 }
   0x7   :  { %16 = vsyncpa [#allocation7 + $0x1], 0  ;;  %s1671_s12 = smov 0   ;;  %s1673_s13 = smov 0  }
   0x8   :  { %s1675_s14 = smov 0   ;;  %s1677_s15 = smov 0  }
   0x9   :  { %s1679_s16 = smov 0   ;;  %s1681_s17 = smov 0  }
   0xa LB: > { %2070 = sst [smem:[#allocation15_spill]] %s1632_s16  ;;  %s1702_s18 = sadd.s32 4294967295, %s1636_s17   ;;  %s1636_s17 = sphi %s1681_s17, %s22_s17   ;;  %s1632_s16 = sphi %s1679_s16, %s2093_s16   ;;  %s1628_s15 = sphi %s1677_s15, %s2092_s15   ;;  %s1624_s14 = sphi %s1675_s14, %s2096_s14   ;;  %s1620_s13 = sphi %s1673_s13, %s2095_s13   ;;  %s1616_s12 = sphi %s1671_s12, %s2094_s12  }
   0xb   : > { %s1261_s19 = sadd.s32 4294967294, %s1636_s17   ;;  %s41_s20 = sadd.s32 1, %s1632_s16 }
   0xc   : > { %s50_s21 = sadd.s32 1, %s1624_s14  ;;  %p43_p0 = scmp.ge.s32.totalorder %s41_s20, 2 }
   0xd   : > { %p57_p1 = scmp.ne.s32.totalorder %s1624_s14, %s1620_s13  ;;  %p58_p2 = scmp.eq.s32.totalorder %s1636_s17, 0 }
   0xe   : > { %p63_p3 = scmp.ne.s32.totalorder %s1620_s13, %s1616_s12  ;;  %s2098_s20 = smov (%p43_p0, %s41_s20), 0 }
   0xf   : > { %2071 = sst [smem:[#allocation16_spill]] %s2098_s20  ;;  %p1714_p4 = por %p58_p2, %p57_p1 }
  0x10   : > { %p64_p5 = scmp.eq.s32.totalorder %s1702_s18, 0  ;;  %s45_s23 = ssub.s32 %s1632_s16, %s2098_s20 }
  0x11   : > { %p145_p6 = scmp.eq.s32.totalorder %s1702_s18, 1  ;;  %p48_p7 = scmp.eq.s32.totalorder %s45_s23, 0 }
  0x12   : > { %p1722_p8 = por %p64_p5, %p63_p3  ;;  %p151_p10 = scmp.eq.s32.totalorder %s1261_s19, 1 }
  0x13   : > { %p1726_p9 = por %p145_p6, %p57_p1  ;;  %p1375_p13 = scmp.lt.s32.totalorder %s1636_s17, 2 }
  0x14   : > { %s2073_s24 = scalar_select %p1722_p8, 1, 0 }
  0x15   : > { %s2074_s25 = scalar_select %p1726_p9, 1, 0 }
  0x16   : > { %s1731_s26 = scalar_select %p48_p7, %s1624_s14, %s50_s21  }
  0x17   : > { %p1733_p11 = por %p151_p10, %p63_p3  ;;  %s2062_s28 = sand.u32 1, %s1624_s14  }
  0x18   : > { %2075 = sst [smem:[#allocation17_spill]] %s1731_s26  ;;  %s1742_s29 = sshll.u32 %s2062_s28, 5 }
  0x19   : > { %s2076_s27 = scalar_select %p1733_p11, 1, 0 }
  0x1a   : > { %s1745_s30 = sshll.u32 %s1632_s16, 9  ;;  %p1749_p0 = pnand %p1375_p13, %p1714_p4 }
  0x1b   : > { %s193_s5 = sand.u32 1, %s1636_s17   ;;  %s2078_s1 = sld [smem:[#allocation18_spill]] }
  0x1c   : > { %s197_s9 = scalar_lea.vmem [#allocation8], %s1742_s29  ;;  %s1765_s11 = scalar_lea.sflag [#allocation9], %s193_s5 }
  0x1d   : > { %s205_s10 = sshll.u32 %s197_s9, 4  ;;  %p1771_p4 = pneg %p1749_p0  ;;  %s1762_s10 = int_to_ptr.vmem [resolvable:$true] %s205_s10 }
  0x21   : > { %s1758_s8 = scalar_lea.hbm %s2078_s1, %s1745_s30  ;;  %s1465_s6 = scalar_lea.hbm %s2078_s1, 1024 }
  0x22   : > { %s1460_s19 = scalar_lea.hbm %s1758_s8, 512  ;;  %p1466_p7 = scmp.lt.u32.totalorder %s1758_s8, %s2078_s1 }
  0x23   : > { %p1461_p3 = scmp.ne.s32.totalorder %s1758_s8, %s1460_s19  ;;  %p1467_p10 = scmp.lt.u32.totalorder %s1465_s6, %s1460_s19 }
  0x24   : > { %p1469_p12 = scmp.lt.u32.totalorder %s1460_s19, %s1758_s8 }
  0x25   : > { %p1463_p5 = pnand %p1771_p4, %p1461_p3  ;;  %p1468_p13 = por %p1467_p10, %p1466_p7 }
  0x27   : > { %p1464_p6 = pneg %p1463_p5  ;;  %p1470_p1 = por %p1469_p12, %p1468_p13 }
  0x29   : > { %p1471_p2 = pnand %p1470_p1, %p1464_p6 }
  0x2b   : > { %1474 = shalt.err (!%p1471_p2)
}
  0x2c   : > { %s1475_s5 = scalar_lea.vmem %s1762_s10, 512  ;;  %s1638_s22 = smov [#allocation8]  }
  0x2d   : > { %p1476_p3 = scmp.ne.s32.totalorder %s1762_s10, %s1475_s5  ;;  %s1480_s23 = sshll.u32 %s1638_s22, 4  ;;  %s1481_s23 = int_to_ptr.vmem [resolvable:$false] %s1480_s23 }
  0x2e   : > { %s1482_s7 = scalar_lea.vmem %s1481_s23, 1024  ;;  %p1483_p9 = scmp.lt.s32.totalorder %s1762_s10, %s1481_s23 }
  0x2f   : > { %p1478_p5 = pnand %p1476_p3, %p1771_p4  ;;  %p1484_p8 = scmp.lt.s32.totalorder %s1482_s7, %s1475_s5 }
  0x31   : > { %p1479_p11 = pneg %p1478_p5  ;;  %p1485_p7 = por %p1484_p8, %p1483_p9 }
  0x33   : > { %p1486_p10 = pnand %p1485_p7, %p1479_p11 }
  0x35   : > { %1489 = shalt.err (!%p1486_p10)
}
  0x36   : > { %s2063_s19 = smov 128   ;;  %s2065_s6 = smov 8  }
  0x37   : > { %1367 = dma.hbm_to_vmem [thread:$0]  (!%p1749_p0), %s1758_s8, 512, %s1762_s10, %s1765_s11, %s2063_s19, %s2063_s19, %s2065_s6  }
  0x38   : > { %p2080_p8 = scmp.lt.s32.totalorder %s1636_s17, 3  ;;  %p2081_p9 = scmp.ge.s32.totalorder %s1636_s17, 1 }
  0x39   : > { %s1810_s23 = scalar_lea.hbm %s2056_s0, %s1745_s30  ;;  %s175_s7 = scalar_lea.vmem [#allocation5], %s1742_s29 }
  0x3a   : > { %p1802_p11 = pnand %p2081_p9, %p2080_p8  ;;  %s183_s28 = sshll.u32 %s175_s7, 4  ;;  %s1813_s28 = int_to_ptr.vmem [resolvable:$true] %s183_s28 }
  0x3b   : > { %s1819_s19 = scalar_lea.hbm %s2058_s2, %s1745_s30  ;;  %s2083_s6 = sand.u32 1, %s1624_s14  }
  0x3c   : > { %s2082_s9 = scalar_select %p1802_p11, 1, 0 }
  0x3d   : > { %s1823_s1 = scalar_lea.sflag [#allocation6], %s2083_s6  ;;  %s1490_s20 = scalar_lea.hbm %s1810_s23, 512 }
  0x3e   : > { %p1491_p12 = scmp.ne.s32.totalorder %s1810_s23, %s1490_s20  ;;  %s1495_s16 = scalar_lea.hbm %s2056_s0, 1024 }
  0x3f   : > { %p1496_p6 = scmp.lt.u32.totalorder %s1810_s23, %s2056_s0  ;;  %p1497_p13 = scmp.lt.u32.totalorder %s1495_s16, %s1490_s20 }
  0x40   : > { %p1493_p1 = pnand %p1491_p12, %p1771_p4  ;;  %p1499_p5 = scmp.lt.u32.totalorder %s1490_s20, %s1810_s23 }
  0x41   : > { %p1498_p3 = por %p1497_p13, %p1496_p6 }
  0x42   : > { %p1494_p2 = pneg %p1493_p1 }
  0x43   : > { %p1500_p7 = por %p1499_p5, %p1498_p3 }
  0x45   : > { %p1501_p10 = pnand %p1500_p7, %p1494_p2 }
  0x47   : > { %1504 = shalt.err (!%p1501_p10)
}
  0x48   : > { %s1505_s30 = scalar_lea.vmem %s1813_s28, 512  ;;  %s1641_s6 = smov [#allocation5]  }
  0x49   : > { %p1506_p8 = scmp.ne.s32.totalorder %s1813_s28, %s1505_s30  ;;  %s1510_s8 = sshll.u32 %s1641_s6, 4  ;;  %s1511_s8 = int_to_ptr.vmem [resolvable:$false] %s1510_s8 }
  0x4a   : > { %s1512_s26 = scalar_lea.vmem %s1511_s8, 1024  ;;  %p1513_p1 = scmp.lt.s32.totalorder %s1813_s28, %s1511_s8 }
  0x4b   : > { %p1508_p9 = pnand %p1506_p8, %p1771_p4  ;;  %p1514_p11 = scmp.lt.s32.totalorder %s1512_s26, %s1505_s30 }
  0x4d   : > { %p1509_p12 = pneg %p1508_p9  ;;  %p1515_p6 = por %p1514_p11, %p1513_p1 }
  0x4f   : > { %p1516_p13 = pnand %p1515_p6, %p1509_p12 }
  0x51   : > { %1519 = shalt.err (!%p1516_p13)
}
  0x52   : > { %s2084_s16 = smov 8   ;;  %s2085_s20 = smov 128  }
  0x53   : > { %1364 = dma.hbm_to_vmem [thread:$0]  (!%p1749_p0), %s1810_s23, 512, %s1813_s28, %s1823_s1, %s2085_s20, %s2085_s20, %s2084_s16  }
  0x54   : > { %s219_s10 = scalar_lea.vmem [#allocation10], %s1742_s29  ;;  %s1520_s22 = scalar_lea.hbm %s1819_s19, 512 }
  0x55   : > { %s227_s5 = sshll.u32 %s219_s10, 4  ;;  %p1521_p11 = scmp.ne.s32.totalorder %s1819_s19, %s1520_s22  ;;  %s1851_s5 = int_to_ptr.vmem [resolvable:$true] %s227_s5 }
  0x56   : > { %s1525_s6 = scalar_lea.hbm %s2058_s2, 1024  ;;  %p1526_p5 = scmp.lt.u32.totalorder %s1819_s19, %s2058_s2 }
  0x57   : > { %p1523_p2 = pnand %p1521_p11, %p1771_p4  ;;  %p1527_p7 = scmp.lt.u32.totalorder %s1525_s6, %s1520_s22 }
  0x58   : > { %p1529_p8 = scmp.lt.u32.totalorder %s1520_s22, %s1819_s19 }
  0x59   : > { %p1524_p3 = pneg %p1523_p2  ;;  %p1528_p10 = por %p1527_p7, %p1526_p5 }
  0x5b   : > { %p1530_p9 = por %p1529_p8, %p1528_p10 }
  0x5d   : > { %p1531_p12 = pnand %p1530_p9, %p1524_p3 }
  0x5f   : > { %1534 = shalt.err (!%p1531_p12)
}
  0x60   : > { %s1535_s1 = scalar_lea.vmem %s1851_s5, 512  ;;  %s1642_s28 = smov [#allocation10]  }
  0x61   : > { %p1536_p1 = scmp.ne.s32.totalorder %s1851_s5, %s1535_s1  ;;  %s1540_s29 = sshll.u32 %s1642_s28, 4  ;;  %s1541_s29 = int_to_ptr.vmem [resolvable:$false] %s1540_s29 }
  0x62   : > { %s1542_s23 = scalar_lea.vmem %s1541_s29, 1024  ;;  %p1543_p11 = scmp.lt.s32.totalorder %s1851_s5, %s1541_s29 }
  0x63   : > { %p1538_p6 = pnand %p1536_p1, %p1771_p4  ;;  %p1544_p2 = scmp.lt.s32.totalorder %s1542_s23, %s1535_s1 }
  0x65   : > { %p1539_p13 = pneg %p1538_p6  ;;  %p1545_p5 = por %p1544_p2, %p1543_p11 }
  0x67   : > { %p1546_p7 = pnand %p1545_p5, %p1539_p13 }
  0x69   : > { %1549 = shalt.err (!%p1546_p7)
}
  0x6a   : > { %1370 = dma.hbm_to_vmem [thread:$0]  (!%p1749_p0), %s1819_s19, 512, %s1851_s5, %s1765_s11, %s2085_s20, %s2085_s20, %s2084_s16  }
  0x6b   : > { %p2086_p4 = scmp.ne.s32.totalorder %s2082_s9, 0 }
  0x6c   : > { %s1881_s21 = sand.u32 (!%p2086_p4), 1, %s1620_s13   ;;  %p2087_p3 = scmp.ne.s32.totalorder (!%p2086_p4), %s2073_s24, 0 }
  0x6d   : > { %239 = sbr.rel (%p2086_p4) target bundleno = 1061 (0x425), region = 32  ;;  %s1884_s10 = sshll.u32 (!%p2086_p4), %s1881_s21, 5 }
  0x6e   : > { %s242_s4 = scalar_lea.sflag (!%p2086_p4), [#allocation6], %s1881_s21  ;;  %s1888_s22 = scalar_lea.vmem (!%p2086_p4), [#allocation5], %s1884_s10 }
  0x74   : > { %1603 = dma.done.wait (%p2087_p3), %s242_s4, 512  }
  0x75   : > { %1605 = vsyncadd (%p2087_p3), %s242_s4, 4294966784  ;;  %s250_s11 = sand.u32 1, %s1702_s18   ;;  %s254_s9 = scalar_lea.vmem [#allocation8], %s1884_s10 }
  0x76   : > { %s251_s19 = scalar_lea.sflag [#allocation9], %s250_s11 }
  0x77   : > { %1607 = dma.done.wait (%p2087_p3), %s251_s19, 1024  }
  0x78   : > { %1609 = vsyncadd (%p2087_p3), %s251_s19, 4294966272  ;;  %vm309_vm0 = vcmask 64512   ;;  %v1643_v0 = vmov 0.0   ;;  %vm1644_vm1 = vmmov 0   ;;  %v318_v1 = vld [vmem:[%s254_s9] sm:$0xff]  ;;  %v319_v2 = vld [vmem:[%s254_s9 + $0x8] sm:$0xff] }
  0x79   : > { %1313 = vmatprep.subr.mxu0 %v1643_v0  ;;  %310 = vst.msk [vmem:[#allocation4] sm:$0xff] %vm309_vm0, %v1643_v0  ;;  %311 = vst.msk [vmem:[#allocation4 + $0x8] sm:$0xff] %vm309_vm0, %v1643_v0  ;;  %1315 = vmatprep.mubr.msk.f32.mxu0 %vm1644_vm1, %v1643_v0  ;;  %v314_v3 = vld [vmem:[%s1888_s22] sm:$0xff]  ;;  %v315_v4 = vld [vmem:[%s1888_s22 + $0x8] sm:$0xff]  ;;  %vm300_vm2 = vcmask 7168   ;;  %v1645_v9 = vmov -inf  }
  0x7a   : > { %312 = vst.msk [vmem:[#allocation4 + $0x10] sm:$0xff] %vm309_vm0, %v1643_v0  ;;  %313 = vst.msk [vmem:[#allocation4 + $0x18] sm:$0xff] %vm309_vm0, %v1643_v0  ;;  %1318 = vmatprep.subr.mxu1 %v1643_v0  ;;  %1320 = vmatprep.mubr.msk.f32.mxu1 %vm1644_vm1, %v1643_v0  ;;  %v320_v5 = vld [vmem:[%s254_s9 + $0x10] sm:$0xff]  ;;  %v321_v6 = vld [vmem:[%s254_s9 + $0x18] sm:$0xff]  ;;  %v1646_v22 = vmov 0   ;;  %s263_s18 = scalar_lea.vmem [#allocation10], %s1884_s10 }
  0x7b   : > { %1314 = vmatpush3.xpose.msk.msra.mxu0 %vm309_vm0, %v318_v1  ;;  %1319 = vmatpush3.xpose.msk.msra.mxu1 %vm309_vm0, %v319_v2  ;;  %v316_v7 = vld [vmem:[%s1888_s22 + $0x10] sm:$0xff]  ;;  %v317_v8 = vld [vmem:[%s1888_s22 + $0x18] sm:$0xff]  ;;  %301 = vst.msk [vmem:[#allocation2] sm:$0xff] %vm300_vm2, %v1645_v9  ;;  %302 = vst.msk [vmem:[#allocation2 + $0x8] sm:$0xff] %vm300_vm2, %v1645_v9  ;;  %s1647_s24 = smov 8   ;;  %s1648_s16 = smov 16  }
  0x7c   : > { %1323 = vmatprep.subr.mxu0 %v1643_v0  ;;  %1328 = vmatprep.subr.mxu1 %v1643_v0  ;;  %303 = vst.msk [vmem:[#allocation2 + $0x10] sm:$0xff] %vm300_vm2, %v1645_v9  ;;  %304 = vst.msk [vmem:[#allocation2 + $0x18] sm:$0xff] %vm300_vm2, %v1645_v9  ;;  %v322_v39 = vld [vmem:[%s263_s18] sm:$0xff]  ;;  %v323_v40 = vld [vmem:[%s263_s18 + $0x8] sm:$0xff]  ;;  %s1649_s20 = smov 24   ;;  %s1277_s5 = sshll.u32 %s1881_s21, 3 }
  0x7d   : > { %305 = vst.msk [vmem:[#allocation3] sm:$0xff] %vm300_vm2, %v1643_v0  ;;  %306 = vst.msk [vmem:[#allocation3 + $0x8] sm:$0xff] %vm300_vm2, %v1643_v0  ;;  %1434 = vset.pattern.permute.xlu0 %v1646_v22  ;;  %1435 = vset.pattern.permute.xlu1 %v1646_v22  ;;  %v324_v52 = vld [vmem:[%s263_s18 + $0x10] sm:$0xff]  ;;  %v325_v55 = vld [vmem:[%s263_s18 + $0x18] sm:$0xff]  ;;  %s295_s7 = scalar_lea.vmem [#allocation11], %s1277_s5  ;;  %vm1100_vm3 = vcmask 130112  }
  0x7e   : > { %1316 = vmatmul.mubr.msk.f32.vlgmr.msra.gmra.mrb[0].mxu0 %vm309_vm0, %v314_v3  ;;  %1321 = vmatmul.mubr.msk.f32.vlgmr.msra.gmra.mrb[0].mxu1 %vm309_vm0, %v315_v4  ;;  %307 = vst.msk [vmem:[#allocation3 + $0x10] sm:$0xff] %vm300_vm2, %v1643_v0  ;;  %308 = vst.msk [vmem:[#allocation3 + $0x18] sm:$0xff] %vm300_vm2, %v1643_v0  ;;  %vm1106_vm4 = vcmask 195712   ;;  %s1291_s30 = sshll.u32 %s1628_s15, 7  ;;  %s1129_s6 = sshll.u32 %s295_s7, 4  ;;  %vm1112_vm5 = vcmask 261312   ;;  %s2009_s6 = int_to_ptr.vmem [resolvable:$true] %s1129_s6 }
  0x7f   : > { %1324 = vmatpush3.xpose.msk.msra.mxu0 %vm309_vm0, %v320_v5  ;;  %1325 = vmatprep.mubr.msk.f32.mxu0 %vm1644_vm1, %v1643_v0  ;;  %s2007_s1 = scalar_lea.hbm %s2059_s3, %s1291_s30  ;;  %s1115_s28 = scalar_lea.sflag [#allocation7], %s1881_s21 }
  0x80   : > { %1329 = vmatpush3.xpose.msk.msra.mxu1 %vm309_vm0, %v321_v6  ;;  %1330 = vmatprep.mubr.msk.f32.mxu1 %vm1644_vm1, %v1643_v0  ;;  %s1550_s29 = scalar_lea.vmem %s2009_s6, 128  ;;  %p2088_p10 = scmp.ne.s32.totalorder %s2074_s25, 0 }
  0x81   : > { %1333 = vmatprep.subr.mxu0 %v1643_v0  ;;  %1338 = vmatprep.subr.mxu1 %v1643_v0  ;;  %p1551_p0 = scmp.ne.s32.totalorder %s2009_s6, %s1550_s29  ;;  %s1650_s15 = smov [#allocation11]  }
  0x82   : > { %1326 = vmatmul.mubr.msk.f32.vlgmr.msra.gmra.mrb[2].mxu0 %vm309_vm0, %v316_v7  ;;  %v1954_v23 = vld [vmem:[#allocation2] sm:$0xff]  ;;  %v1959_v26 = vld [vmem:[#allocation2 + $0x8] sm:$0xff]  ;;  %s1554_s23 = sshll.u32 %s1650_s15, 4  ;;  %s1555_s23 = int_to_ptr.vmem [resolvable:$false] %s1554_s23 }
  0x83   : > { %1331 = vmatmul.mubr.msk.f32.vlgmr.msra.gmra.mrb[2].mxu1 %vm309_vm0, %v317_v8  ;;  %1335 = vmatprep.mubr.msk.f32.mxu0 %vm1644_vm1, %v1643_v0  ;;  %v1961_v27 = vld [vmem:[#allocation2 + $0x10] sm:$0xff]  ;;  %v634_v33 = vld [vmem:[#allocation2 + $0x18] sm:$0xff]  ;;  %p1552_p8 = pnand %p1551_p0, %p2088_p10  ;;  %s1556_s10 = scalar_lea.vmem %s1555_s23, 256 }
  0x84   : > { %1340 = vmatprep.mubr.msk.f32.mxu1 %vm1644_vm1, %v1643_v0  ;;  %1334 = vmatpush3.msra.mxu0 %v322_v39  ;;  %v696_v6 = vld [vmem:[#allocation3 + $0x8] sm:$0xff]  ;;  %p1557_p12 = scmp.lt.s32.totalorder %s2009_s6, %s1555_s23  ;;  %p1558_p1 = scmp.lt.s32.totalorder %s1556_s10, %s1550_s29 }
  0x85   : > { %1343 = vmatprep.subr.mxu0 %v1643_v0  ;;  %1339 = vmatpush3.msra.mxu1 %v323_v40  ;;  %v697_v9 = vld [vmem:[#allocation3 + $0x10] sm:$0xff]  ;;  %p1553_p9 = pneg %p1552_p8 }
  0x86   : > { %1348 = vmatprep.subr.mxu1 %v1643_v0  ;;  %p1559_p6 = por %p1558_p1, %p1557_p12 }
  0x88   : > { %p1560_p13 = pnand %p1559_p6, %p1553_p9 }
 0x151   : > { %v399_v10 = vpop.f32.mrb[0].mxu0  ;;  %v475_v11 = vpop.f32.mrb[0].mxu1 }
 0x152   : > { %v1317_v12 = vpop.f32.mrb[1].mxu0  ;;  %v635_v13 = vsel %vm309_vm0, %v399_v10, -inf  ;;  %v1322_v14 = vpop.f32.mrb[1].mxu1  ;;  %v638_v15 = vsel %vm309_vm0, %v475_v11, -inf }
 0x153   : > { %636 = vmax.xlane.f32.xlu0 %v635_v13  ;;  %v698_v13 = vld [vmem:[#allocation3 + $0x18] sm:$0xff] }
 0x155   : > { %v551_v16 = vpop.f32.mrb[2].mxu0 }
 0x156   : > { %v1327_v17 = vpop.f32.mrb[3].mxu0  ;;  %v641_v18 = vsel %vm309_vm0, %v551_v16, -inf  ;;  %v627_v19 = vpop.f32.mrb[2].mxu1 }
 0x157   : > { %639 = vmax.xlane.f32.xlu0 %v638_v15  ;;  %642 = vmax.xlane.f32.xlu1 %v641_v18  ;;  %v1332_v20 = vpop.f32.mrb[3].mxu1  ;;  %v644_v21 = vsel %vm309_vm0, %v627_v19, -inf  ;;  %v695_v18 = vld [vmem:[#allocation3] sm:$0xff] }
 0x15b   : > { %645 = vmax.xlane.f32.xlu1 %v644_v21 }
 0x1e0   : > { %v637_v24 = vpop.xlane.xlu0 %636 }
 0x1e1   : > { %v1957_v25 = vmax.f32 %v1954_v23, %v637_v24 }
 0x1e3   : > { %v651_v28 = vsub.f32 %v1954_v23, %v1957_v25  ;;  %1052 = vst.msk [vmem:[#allocation2] sm:$0xff] %vm300_vm2, %v1957_v25  ;;  %665 = vperm.xlu0 %1434, %v1957_v25  }
 0x1e4   : > { %v640_v29 = vpop.xlane.xlu0 %639  ;;  %v643_v30 = vpop.xlane.xlu1 %642 }
 0x1e5   : > { %v648_v31 = vmax.f32 %v1959_v26, %v640_v29  ;;  %v649_v32 = vmax.f32 %v1961_v27, %v643_v30  ;;  %v655_v5 = vmul.f32 1.442695, %v651_v28 }
 0x1e7   : > { %v652_v34 = vsub.f32 %v1959_v26, %v648_v31  ;;  %1053 = vst.msk [vmem:[#allocation2 + $0x8] sm:$0xff] %vm300_vm2, %v648_v31  ;;  %670 = vperm.xlu1 %1435, %v648_v31   ;;  %v653_v35 = vsub.f32 %v1961_v27, %v649_v32  ;;  %1054 = vst.msk [vmem:[#allocation2 + $0x10] sm:$0xff] %vm300_vm2, %v649_v32  ;;  %v725_v31 = vld [vmem:[#allocation4 + $0x8] sm:$0xff] }
 0x1e8   : > { %v646_v36 = vpop.xlane.xlu1 %645 }
 0x1e9   : > { %v650_v37 = vmax.f32 %v634_v33, %v646_v36  ;;  %v659_v62 = vmul.f32 1.442695, %v653_v35  ;;  %v657_v1 = vmul.f32 1.442695, %v652_v34  ;;  %v726_v36 = vld [vmem:[#allocation4 + $0x10] sm:$0xff] }
 0x1eb   : > { %675 = vperm.xlu1 %1435, %v649_v32   ;;  %v654_v38 = vsub.f32 %v634_v33, %v650_v37  ;;  %1055 = vst.msk [vmem:[#allocation2 + $0x18] sm:$0xff] %vm300_vm2, %v650_v37 }
 0x1ef   : > { %680 = vperm.xlu1 %1435, %v650_v37  }
 0x262   : > { %v666_v41 = vpop.permute.xlu0 %665 }
 0x263   : > { %v683_v42 = vsub.f32 %v399_v10, %v666_v41 }
 0x265   : > { %v687_v43 = vmul.f32 1.442695, %v683_v42  ;;  %v727_v42 = vld [vmem:[#allocation4 + $0x18] sm:$0xff] }
 0x266   : > { %v671_v44 = vpop.permute.xlu1 %670 }
 0x267   : > { %1436 = vpow2.f32 %v687_v43  ;;  %v684_v45 = vsub.f32 %v475_v11, %v671_v44 }
 0x269   : > { %v689_v46 = vmul.f32 1.442695, %v684_v45 }
 0x26a   : > { %v676_v47 = vpop.permute.xlu1 %675 }
 0x26b   : > { %1438 = vpow2.f32 %v689_v46  ;;  %v685_v48 = vsub.f32 %v551_v16, %v676_v47 }
 0x26d   : > { %v691_v49 = vmul.f32 1.442695, %v685_v48 }
 0x26e   : > { %v681_v50 = vpop.permute.xlu1 %680 }
 0x26f   : > { %1440 = vpow2.f32 %v691_v49  ;;  %v686_v51 = vsub.f32 %v627_v19, %v681_v50 }
 0x271   : > { %v1437_v53 = vpop.eup %1436  ;;  %v693_v54 = vmul.f32 1.442695, %v686_v51 }
 0x272   : > { %1336 = vmatmul.mubr.msk.f32.vlgmr.msra.gmra.mrb[4].mxu0 %vm309_vm0, %v1437_v53  ;;  %v703_v63 = vsel %vm309_vm0, %v1437_v53, 0.0 }
 0x273   : > { %1442 = vpow2.f32 %v693_v54  ;;  %1344 = vmatpush3.msra.mxu0 %v324_v52  ;;  %1345 = vmatprep.mubr.msk.f32.mxu0 %vm1644_vm1, %v1643_v0 }
 0x274   : > { %1444 = vpow2.f32 %v659_v62 }
 0x275   : > { %v1439_v56 = vpop.eup %1438  ;;  %1446 = vpow2.f32 %v657_v1 }
 0x276   : > { %1341 = vmatmul.mubr.msk.f32.vlgmr.msra.gmra.mrb[4].mxu1 %vm309_vm0, %v1439_v56  ;;  %v706_v57 = vsel %vm309_vm0, %v1439_v56, 0.0 }
 0x277   : > { %707 = vadd.xlane.f32.xlu1 %v706_v57  ;;  %1349 = vmatpush3.msra.mxu1 %v325_v55  ;;  %v724_v57 = vld [vmem:[#allocation4] sm:$0xff] }
 0x278   : > { %1350 = vmatprep.mubr.msk.f32.mxu1 %vm1644_vm1, %v1643_v0  ;;  %v661_v0 = vmul.f32 1.442695, %v654_v38 }
 0x279   : > { %v1441_v58 = vpop.eup %1440 }
 0x27a   : > { %1346 = vmatmul.mubr.msk.f32.vlgmr.msra.gmra.mrb[6].mxu0 %vm309_vm0, %v1441_v58  ;;  %v709_v59 = vsel %vm309_vm0, %v1441_v58, 0.0  ;;  %1448 = vpow2.f32 %v661_v0 }
 0x27b   : > { %710 = vadd.xlane.f32.xlu0 %v709_v59  ;;  %1450 = vpow2.f32 %v655_v5 }
 0x27d   : > { %v1443_v60 = vpop.eup %1442 }
 0x27e   : > { %1351 = vmatmul.mubr.msk.f32.vlgmr.msra.gmra.mrb[6].mxu1 %vm309_vm0, %v1443_v60  ;;  %v712_v61 = vsel %vm309_vm0, %v1443_v60, 0.0  ;;  %v1445_v2 = vpop.eup %1444 }
 0x27f   : > { %713 = vadd.xlane.f32.xlu1 %v712_v61  ;;  %v1447_v3 = vpop.eup %1446  ;;  %v701_v11 = vmul.f32 %v1445_v2, %v697_v9 }
 0x280   : > { %v700_v7 = vmul.f32 %v1447_v3, %v696_v6 }
 0x283   : > { %704 = vadd.xlane.f32.xlu1 %v703_v63 }
 0x284   : > { %v1449_v4 = vpop.eup %1448 }
 0x285   : > { %v702_v15 = vmul.f32 %v1449_v4, %v698_v13  ;;  %v1451_v16 = vpop.eup %1450 }
 0x286   : > { %v699_v21 = vmul.f32 %v1451_v16, %v695_v18 }
 0x291   : > { %740 = vperm.xlu0 %1434, %v1445_v2  }
 0x294   : > { %735 = vperm.xlu1 %1435, %v1447_v3  }
 0x298   : > { %745 = vperm.xlu1 %1435, %v1449_v4  }
 0x304   : > { %v708_v8 = vpop.xlane.xlu1 %707 }
 0x305   : > { %v716_v10 = vadd.f32 %v708_v8, %v700_v7 }
 0x307   : > { %721 = vst.msk [vmem:[#allocation3 + $0x8] sm:$0xff] %vm300_vm2, %v716_v10 }
 0x308   : > { %v711_v12 = vpop.xlane.xlu0 %710 }
 0x309   : > { %v717_v14 = vadd.f32 %v711_v12, %v701_v11 }
 0x30b   : > { %722 = vst.msk [vmem:[#allocation3 + $0x10] sm:$0xff] %vm300_vm2, %v717_v14 }
 0x30c   : > { %v714_v17 = vpop.xlane.xlu1 %713 }
 0x30d   : > { %v718_v19 = vadd.f32 %v714_v17, %v702_v15 }
 0x30e   : > { %v1060_v20 = vld [vmem:[#allocation3 + $0x8] sm:$0xff] }
 0x30f   : > { %723 = vst.msk [vmem:[#allocation3 + $0x18] sm:$0xff] %vm300_vm2, %v718_v19  ;;  %1452 = vrcp.f32 %v1060_v20 }
 0x310   : > { %v705_v22 = vpop.xlane.xlu1 %704  ;;  %v741_v37 = vpop.permute.xlu0 %740 }
 0x311   : > { %v715_v23 = vadd.f32 %v705_v22, %v699_v21  ;;  %v750_v41 = vmul.f32 %v741_v37, %v726_v36 }
 0x312   : > { %v1061_v24 = vld [vmem:[#allocation3 + $0x10] sm:$0xff] }
 0x313   : > { %720 = vst.msk [vmem:[#allocation3] sm:$0xff] %vm300_vm2, %v715_v23  ;;  %1454 = vrcp.f32 %v1061_v24 }
 0x314   : > { %v736_v32 = vpop.permute.xlu1 %735 }
 0x315   : > { %v749_v35 = vmul.f32 %v736_v32, %v725_v31 }
 0x316   : > { %v1062_v25 = vld [vmem:[#allocation3 + $0x18] sm:$0xff] }
 0x317   : > { %1456 = vrcp.f32 %v1062_v25 }
 0x318   : > { %v746_v43 = vpop.permute.xlu1 %745 }
 0x319   : > { %v1453_v26 = vpop.eup %1452  ;;  %v751_v47 = vmul.f32 %v746_v43, %v727_v42 }
 0x31a   : > { %1078 = vperm.xlu1 %1435, %v1453_v26   ;;  %v1059_v27 = vld [vmem:[#allocation3] sm:$0xff] }
 0x31b   : > { %1458 = vrcp.f32 %v1059_v27 }
 0x31d   : > { %v1455_v28 = vpop.eup %1454 }
 0x31e   : > { %1083 = vperm.xlu1 %1435, %v1455_v28  }
 0x321   : > { %v1457_v29 = vpop.eup %1456 }
 0x322   : > { %1088 = vperm.xlu0 %1434, %v1457_v29   ;;  %730 = vperm.xlu1 %1435, %v1451_v16  }
 0x325   : > { %v1459_v30 = vpop.eup %1458 }
 0x326   : > { %1073 = vperm.xlu0 %1434, %v1459_v30  }
 0x345   : > { %v821_v33 = vpop.f32.mrb[4].mxu0 }
 0x346   : > { %v1337_v34 = vpop.f32.mrb[5].mxu0 }
 0x349   : > { %v894_v38 = vpop.f32.mrb[4].mxu1 }
 0x34a   : > { %v1045_v39 = vadd.f32 %v894_v38, %v749_v35  ;;  %v1342_v40 = vpop.f32.mrb[5].mxu1 }
 0x34c   : > { %1049 = vst.msk [vmem:[#allocation4 + $0x8] sm:$0xff] %vm309_vm0, %v1045_v39 }
 0x34d   : > { %v967_v44 = vpop.f32.mrb[6].mxu0 }
 0x34e   : > { %v1046_v45 = vadd.f32 %v967_v44, %v750_v41  ;;  %v1347_v46 = vpop.f32.mrb[7].mxu0 }
 0x350   : > { %1050 = vst.msk [vmem:[#allocation4 + $0x10] sm:$0xff] %vm309_vm0, %v1046_v45 }
 0x351   : > { %v1040_v48 = vpop.f32.mrb[6].mxu1 }
 0x352   : > { %v1047_v49 = vadd.f32 %v1040_v48, %v751_v47  ;;  %v1352_v50 = vpop.f32.mrb[7].mxu1 }
 0x353   : > { %v1068_v51 = vld [vmem:[#allocation4 + $0x8] sm:$0xff] }
 0x354   : > { %1051 = vst.msk [vmem:[#allocation4 + $0x18] sm:$0xff] %vm309_vm0, %v1047_v49 }
 0x357   : > { %v1069_v55 = vld [vmem:[#allocation4 + $0x10] sm:$0xff] }
 0x35b   : > { %v1070_v58 = vld [vmem:[#allocation4 + $0x18] sm:$0xff] }
 0x399   : > { %v1079_v52 = vpop.permute.xlu1 %1078 }
 0x39a   : > { %v1092_v53 = vmul.f32 %v1079_v52, %v1068_v51 }
 0x39c   : > { %1097 = vrot.lane.b32.xlu1 %v1092_v53, %s1647_s24 }
 0x39d   : > { %v1084_v54 = vpop.permute.xlu1 %1083 }
 0x39e   : > { %v1093_v56 = vmul.f32 %v1084_v54, %v1069_v55 }
 0x3a0   : > { %1103 = vrot.lane.b32.xlu0 %v1093_v56, %s1648_s16 }
 0x3a1   : > { %v1089_v59 = vpop.permute.xlu0 %1088  ;;  %v731_v60 = vpop.permute.xlu1 %730 }
 0x3a2   : > { %v1094_v61 = vmul.f32 %v1089_v59, %v1070_v58  ;;  %v748_v62 = vmul.f32 %v731_v60, %v724_v57 }
 0x3a4   : > { %v1044_v63 = vadd.f32 %v821_v33, %v748_v62  ;;  %1109 = vrot.lane.b32.xlu1 %v1094_v61, %s1649_s20 }
 0x3a5   : > { %v1074_v0 = vpop.permute.xlu0 %1073 }
 0x3a6   : > { %1048 = vst.msk [vmem:[#allocation4] sm:$0xff] %vm309_vm0, %v1044_v63 }
 0x3ad   : > { %v1067_v1 = vld [vmem:[#allocation4] sm:$0xff] }
 0x3ae   : > { %v1091_v2 = vmul.f32 %v1074_v0, %v1067_v1 }
 0x3b0   : > { %1095 = vst.msk [vmem:[%s295_s7] sm:$0xff] %vm309_vm0, %v1091_v2 }
 0x40e   : > { %v1098_v3 = vpop.permute.xlu1 %1097 }
 0x40f   : > { %1101 = vst.msk [vmem:[%s295_s7] sm:$0xff] %vm1100_vm3, %v1098_v3 }
 0x412   : > { %v1104_v4 = vpop.permute.xlu0 %1103 }
 0x413   : > { %1107 = vst.msk [vmem:[%s295_s7] sm:$0xff] %vm1106_vm4, %v1104_v4 }
 0x416   : > { %v1110_v5 = vpop.permute.xlu1 %1109 }
 0x417   : > { %1113 = vst.msk [vmem:[%s295_s7] sm:$0xff] %vm1112_vm5, %v1110_v5 }
 0x418   : > { %1563 = shalt.err (!%p1560_p13)
}
 0x419   : > { %s1564_s21 = scalar_lea.hbm %s2007_s1, 128  ;;  %s1568_s11 = scalar_lea.hbm %s2059_s3, 256 }
 0x41a   : > { %p1565_p11 = scmp.ne.s32.totalorder %s2007_s1, %s1564_s21  ;;  %p1569_p7 = scmp.lt.u32.totalorder %s2007_s1, %s2059_s3 }
 0x41b   : > { %p1570_p4 = scmp.lt.u32.totalorder %s1568_s11, %s1564_s21  ;;  %p1572_p0 = scmp.lt.u32.totalorder %s1564_s21, %s2007_s1 }
 0x41c   : > { %p1566_p2 = pnand %p1565_p11, %p2088_p10 }
 0x41d   : > { %p1571_p3 = por %p1570_p4, %p1569_p7 }
 0x41e   : > { %p1567_p5 = pneg %p1566_p2 }
 0x41f   : > { %p1573_p8 = por %p1572_p0, %p1571_p3 }
 0x421   : > { %p1574_p9 = pnand %p1573_p8, %p1567_p5 }
 0x423   : > { %1577 = shalt.err (!%p1574_p9)
}
 0x424   : > { %1359 = dma.vmem_to_hbm [thread:$0]  (%p2088_p10), %s2009_s6, 128, %s2007_s1, %s1115_s28  }
 0x425 PF: > { %s1141_s18 = sand.u32 1, %s1616_s12   ;;  %p2089_p12 = scmp.ne.s32.totalorder %s2076_s27, 0 }
 0x426   : > { %p2090_p1 = scmp.ge.s32.totalorder %s1636_s17, 2  ;;  %s1142_s24 = scalar_lea.sflag [#allocation7], %s1141_s18 }
 0x428   : > { %p1372_p6 = pnand %p2090_p1, %p2089_p12 }
 0x42a   : > { %1611 = dma.done.wait (!%p1372_p6), %s1142_s24, 128  }
 0x42b   : > { %1613 = vsyncadd (!%p1372_p6), %s1142_s24, 4294967168  ;;  %s22_s17 = sadd.s32 1, %s1636_s17   ;;  %s2091_s25 = sld [smem:[#allocation17_spill]] }
 0x42c   : > { %p19_p13 = scmp.ge.s32.totalorder %s22_s17, 4   ;;  %s2092_s15 = sld [smem:[#allocation15_spill]] }
 0x42d   : > { %s2093_s16 = sld [smem:[#allocation16_spill]]  ;;  %s2094_s12 = smov %s1620_s13 }
 0x42e   : > { %s2095_s13 = smov %s1624_s14  ;;  %21 = sbr.rel (!%p19_p13) target bundleno = 10 (0xa), region = 109 }
 0x431   : > { %s2096_s14 = smov %s2091_s25 }
 0x435   :  { %1147 = vsyncpa [#allocation6], 1 }
 0x436   :  { %1149 = vsyncpa [#allocation6 + $0x1], 1 }
 0x437   :  { %1150 = vsyncpa [#allocation9], 1 }
 0x438   :  { %1152 = vsyncpa [#allocation9 + $0x1], 1 }
 0x439   :  { %1153 = vsyncpa [#allocation7], 1 }
 0x43a   :  { %1155 = vsyncpa [#allocation7 + $0x1], 1 }

</bundles_post_ra>
